<compile_context>
chip_gen: v6e
topology: v6e:2x2x1
jax: 0.10.0
libtpu: 0.0.40
codegen_flags: <defaults>
</compile_context>

<pallas_src>
import jax
import jax.numpy as jnp
from jax import lax
from jax.experimental import pallas as pl
from jax.experimental.pallas import tpu as pltpu

# --- small, TPU-friendly demo config (structure matches the PyTorch module) ---
HIDDEN = 128          # config.hidden_size analogue (lane-dense, multiple of 128)
VOCAB = 512           # config.vocab_size analogue
MAX_POS = 64          # config.max_position_embeddings analogue
TYPE_VOCAB = 2        # config.type_vocab_size
LN_EPS = 1e-12        # config.layer_norm_eps
PAD_TOKEN_ID = 0      # config.pad_token_id (affects init only; forward is a plain lookup)

BATCH = 2
SEQ = 16
# Tokens per grid step.  Demo: one step covers the whole (B*S) problem.
# Real workloads: 128 (v5e) / 256 (v6e, v7x).  Must be a multiple of SEQ so the
# position slab tiles cleanly, and a multiple of 8 sublanes.
TOK_TILE = BATCH * SEQ


def bert_embeddings_kernel(idt_ref, word_tab_ref, type_tab_ref, pos_tab_ref,
                           gamma_ref, beta_ref, out_ref):
    idt = idt_ref[...]                     # (T, 2) int32: [:,0]=token id, [:,1]=type id
    ids = idt[:, 0:1]                      # (T, 1)
    tts = idt[:, 1:2]                      # (T, 1)

    # --- word embeddings: exact row gather as a 0/1 one-hot f32 MXU matmul ---
    onehot = (lax.broadcasted_iota(jnp.int32, (TOK_TILE, VOCAB), 1)
              == ids).astype(jnp.float32)
    emb = jnp.dot(onehot, word_tab_ref[...], preferred_element_type=jnp.float32)

    # --- token-type embeddings: 2 rows -> a single VPU select, no MXU ---
    emb = emb + jnp.where(tts == 0, type_tab_ref[0:1, :], type_tab_ref[1:2, :])

    # --- position embeddings: contiguous 0..SEQ-1 per sequence -> direct add ---
    emb = emb + jnp.tile(pos_tab_ref[...], (TOK_TILE // SEQ, 1))

    # --- LayerNorm over hidden (one-pass stats, rsqrt on the EUP slot) ---
    inv_h = 1.0 / HIDDEN
    mean = jnp.sum(emb, axis=-1, keepdims=True) * inv_h
    meansq = jnp.sum(emb * emb, axis=-1, keepdims=True) * inv_h
    var = meansq - mean * mean
    y = (emb - mean) * lax.rsqrt(var + LN_EPS)
    y = y * gamma_ref[...] + beta_ref[...]

    # TODO(synk): dropout is eval-mode identity.
    out_ref[...] = y.astype(out_ref.dtype)


@jax.jit
def bert_embeddings(input_ids, token_type_ids,
                    word_table, pos_table, type_table, gamma, beta):
    B, S = input_ids.shape
    N = B * S
    H = word_table.shape[1]
    assert N % TOK_TILE == 0 and TOK_TILE % S == 0

    # Merge ids + type ids into one (N, 2) int32 stream (one narrow DMA).
    idt = jnp.stack([input_ids.reshape(N).astype(jnp.int32),
                     token_type_ids.reshape(N).astype(jnp.int32)], axis=1)

    # The module uses position_ids = arange(S); pass just that slab.
    pos_slab = pos_table[:S]                         # (S, H)

    const = lambda i: (0, 0)                         # grid-invariant operands
    single = pl.Buffered(1)                          # ...so single-buffer them

    out = pl.pallas_call(
        bert_embeddings_kernel,
        out_shape=jax.ShapeDtypeStruct((N, H), jnp.float32),
        grid_spec=pltpu.PrefetchScalarGridSpec(
            num_scalar_prefetch=0,
            grid=(N // TOK_TILE,),
            in_specs=[
                pl.BlockSpec((TOK_TILE, 2), lambda i: (i, 0)),             # ids/types
                pl.BlockSpec((VOCAB, H), const, pipeline_mode=single),     # word table
                pl.BlockSpec((TYPE_VOCAB, H), const, pipeline_mode=single),  # type table
                pl.BlockSpec((S, H), const, pipeline_mode=single),         # pos slab
                pl.BlockSpec((1, H), const, pipeline_mode=single),         # LN gamma
                pl.BlockSpec((1, H), const, pipeline_mode=single),         # LN beta
            ],
            out_specs=pl.BlockSpec((TOK_TILE, H), lambda i: (i, 0)),
        ),
        # Single grid step at demo size: no megacore sharding (sharding here
        # would only duplicate the table DMA per core).  With many steps,
        # switch to ("parallel",).
        compiler_params=pltpu.CompilerParams(
            dimension_semantics=("arbitrary",)),
    )(idt, word_table, type_table, pos_slab, gamma, beta)

    return out.reshape(B, S, H)


def reference(input_ids, token_type_ids, word_table, pos_table, type_table,
              gamma, beta):
    """Pure-JAX reference matching the PyTorch forward (eval mode)."""
    B, S = input_ids.shape
    we = word_table[input_ids]                       # (B, S, H)
    te = type_table[token_type_ids]                  # (B, S, H)
    pe = pos_table[jnp.arange(S)][None, :, :]        # (1, S, H)
    emb = we + te + pe
    mean = jnp.mean(emb, axis=-1, keepdims=True)
    var = jnp.mean((emb - mean) ** 2, axis=-1, keepdims=True)
    y = (emb - mean) / jnp.sqrt(var + LN_EPS)
    return y * gamma.reshape(1, 1, -1) + beta.reshape(1, 1, -1)


if __name__ == "__main__":
    key = jax.random.PRNGKey(0)
    ks = jax.random.split(key, 5)
    init = 0.02  # config.initializer_range

    input_ids = jax.random.randint(ks[0], (BATCH, SEQ), 0, VOCAB, dtype=jnp.int32)
    token_type_ids = jax.random.randint(ks[1], (BATCH, SEQ), 0, TYPE_VOCAB,
                                        dtype=jnp.int32)

    word_table = init * jax.random.normal(ks[2], (VOCAB, HIDDEN), dtype=jnp.float32)
    word_table = word_table.at[PAD_TOKEN_ID].set(0.0)   # nn.Embedding padding_idx init
    pos_table = init * jax.random.normal(ks[3], (MAX_POS, HIDDEN), dtype=jnp.float32)
    type_table = init * jax.random.normal(ks[4], (TYPE_VOCAB, HIDDEN), dtype=jnp.float32)
    gamma = jnp.ones((1, HIDDEN), dtype=jnp.float32)
    beta = jnp.zeros((1, HIDDEN), dtype=jnp.float32)

    out = bert_embeddings(input_ids, token_type_ids,
                          word_table, pos_table, type_table, gamma, beta)
    out = jax.block_until_ready(out)

    ref = reference(input_ids, token_type_ids,
                    word_table, pos_table, type_table, gamma, beta)
    assert out.shape == (BATCH, SEQ, HIDDEN)
    assert jnp.allclose(out, ref, atol=1e-4, rtol=1e-4), "mismatch vs reference"

    print("KERNEL_OK")
</pallas_src>

<mosaic_0001>
module attributes {stable_mosaic.version = 11 : i64} {
  func.func @bert_embeddings_kernel(%arg0: i32, %arg1: memref<32x2xi32, #tpu.memory_space<vmem>>, %arg2: memref<512x128xf32, #tpu.memory_space<vmem>>, %arg3: memref<2x128xf32, #tpu.memory_space<vmem>>, %arg4: memref<16x128xf32, #tpu.memory_space<vmem>>, %arg5: memref<1x128xf32, #tpu.memory_space<vmem>>, %arg6: memref<1x128xf32, #tpu.memory_space<vmem>>, %arg7: memref<32x128xf32, #tpu.memory_space<vmem>>) attributes {dimension_semantics = [#tpu.dimension_semantics<arbitrary>], iteration_bounds = array<i64: 1>, scalar_prefetch = 0 : i64, scratch_operands = 0 : i64, tpu.core_type = #tpu.core_type<tc>, window_params = [{transform_indices = @transform_0, window_bounds = array<i64: 32, 2>}, {pipeline_mode = #tpu.pipeline_mode<synchronous>, transform_indices = @transform_1, window_bounds = array<i64: 512, 128>}, {pipeline_mode = #tpu.pipeline_mode<synchronous>, transform_indices = @transform_2, window_bounds = array<i64: 2, 128>}, {pipeline_mode = #tpu.pipeline_mode<synchronous>, transform_indices = @transform_3, window_bounds = array<i64: 16, 128>}, {pipeline_mode = #tpu.pipeline_mode<synchronous>, transform_indices = @transform_4, window_bounds = array<i64: 1, 128>}, {pipeline_mode = #tpu.pipeline_mode<synchronous>, transform_indices = @transform_5, window_bounds = array<i64: 1, 128>}, {transform_indices = @transform_6, window_bounds = array<i64: 32, 128>}]} {
    %c0 = arith.constant 0 : index
    %c0_0 = arith.constant 0 : index
    %0 = vector.load %arg1[%c0, %c0_0] : memref<32x2xi32, #tpu.memory_space<vmem>>, vector<32x2xi32>
    %1 = vector.extract_strided_slice %0 {offsets = [0, 0], sizes = [32, 1], strides = [1, 1]} : vector<32x2xi32> to vector<32x1xi32>
    %2 = vector.extract_strided_slice %0 {offsets = [0, 1], sizes = [32, 1], strides = [1, 1]} : vector<32x2xi32> to vector<32x1xi32>
    %3 = tpu.iota {dimensions = array<i32: 1>} : vector<32x512xi32>
    %4 = vector.broadcast %1 : vector<32x1xi32> to vector<32x512xi32>
    %5 = arith.cmpi eq, %3, %4 : vector<32x512xi32>
    %6 = arith.extui %5 : vector<32x512xi1> to vector<32x512xi32>
    %7 = arith.sitofp %6 : vector<32x512xi32> to vector<32x512xf32>
    %c0_1 = arith.constant 0 : index
    %c0_2 = arith.constant 0 : index
    %8 = vector.load %arg2[%c0_1, %c0_2] : memref<512x128xf32, #tpu.memory_space<vmem>>, vector<512x128xf32>
    %cst = arith.constant dense<0.000000e+00> : vector<32x128xf32>
    %9 = tpu.matmul %7, %8, %cst {dimension_numbers = #tpu.dot_dimension_numbers<[1], [0], [0], [1], [0, 0, 1, 1], [], []>} : vector<32x512xf32>, vector<512x128xf32>, vector<32x128xf32> -> vector<32x128xf32>
    %c0_i32 = arith.constant 0 : i32
    %10 = vector.broadcast %c0_i32 : i32 to vector<32x1xi32>
    %11 = arith.cmpi eq, %2, %10 : vector<32x1xi32>
    %c0_3 = arith.constant 0 : index
    %c0_4 = arith.constant 0 : index
    %12 = vector.load %arg3[%c0_3, %c0_4] : memref<2x128xf32, #tpu.memory_space<vmem>>, vector<1x128xf32>
    %c1 = arith.constant 1 : index
    %c0_5 = arith.constant 0 : index
    %13 = vector.load %arg3[%c1, %c0_5] : memref<2x128xf32, #tpu.memory_space<vmem>>, vector<1x128xf32>
    %14 = vector.shape_cast %11 : vector<32x1xi1> to vector<32x1xi1>
    %15 = vector.broadcast %14 : vector<32x1xi1> to vector<32x128xi1>
    %16 = vector.shape_cast %12 : vector<1x128xf32> to vector<1x128xf32>
    %17 = vector.broadcast %16 : vector<1x128xf32> to vector<32x128xf32>
    %18 = vector.shape_cast %13 : vector<1x128xf32> to vector<1x128xf32>
    %19 = vector.broadcast %18 : vector<1x128xf32> to vector<32x128xf32>
    %20 = arith.select %15, %17, %19 : vector<32x128xi1>, vector<32x128xf32>
    %21 = arith.addf %9, %20 : vector<32x128xf32>
    %c0_6 = arith.constant 0 : index
    %c0_7 = arith.constant 0 : index
    %22 = vector.load %arg4[%c0_6, %c0_7] : memref<16x128xf32, #tpu.memory_space<vmem>>, vector<16x128xf32>
    %23 = tpu.concatenate %22, %22 in 0 : vector<16x128xf32>, vector<16x128xf32> -> vector<32x128xf32>
    %24 = arith.addf %21, %23 : vector<32x128xf32>
    %cst_8 = arith.constant dense<0.000000e+00> : vector<32xf32>
    %25 = vector.multi_reduction <add>, %24, %cst_8 [1] : vector<32x128xf32> to vector<32xf32>
    %26 = vector.shape_cast %25 : vector<32xf32> to vector<32x1xf32>
    %cst_9 = arith.constant 7.812500e-03 : f32
    %27 = vector.broadcast %cst_9 : f32 to vector<32x1xf32>
    %28 = arith.mulf %26, %27 : vector<32x1xf32>
    %29 = arith.mulf %24, %24 : vector<32x128xf32>
    %cst_10 = arith.constant dense<0.000000e+00> : vector<32xf32>
    %30 = vector.multi_reduction <add>, %29, %cst_10 [1] : vector<32x128xf32> to vector<32xf32>
    %31 = vector.shape_cast %30 : vector<32xf32> to vector<32x1xf32>
    %cst_11 = arith.constant 7.812500e-03 : f32
    %32 = vector.broadcast %cst_11 : f32 to vector<32x1xf32>
    %33 = arith.mulf %31, %32 : vector<32x1xf32>
    %34 = arith.mulf %28, %28 : vector<32x1xf32>
    %35 = arith.subf %33, %34 : vector<32x1xf32>
    %36 = vector.broadcast %28 : vector<32x1xf32> to vector<32x128xf32>
    %37 = arith.subf %24, %36 : vector<32x128xf32>
    %cst_12 = arith.constant 9.99999996E-13 : f32
    %38 = vector.broadcast %cst_12 : f32 to vector<32x1xf32>
    %39 = arith.addf %35, %38 : vector<32x1xf32>
    %40 = math.rsqrt %39 : vector<32x1xf32>
    %41 = vector.broadcast %40 : vector<32x1xf32> to vector<32x128xf32>
    %42 = arith.mulf %37, %41 : vector<32x128xf32>
    %c0_13 = arith.constant 0 : index
    %c0_14 = arith.constant 0 : index
    %43 = vector.load %arg5[%c0_13, %c0_14] : memref<1x128xf32, #tpu.memory_space<vmem>>, vector<1x128xf32>
    %44 = vector.broadcast %43 : vector<1x128xf32> to vector<32x128xf32>
    %45 = arith.mulf %42, %44 : vector<32x128xf32>
    %c0_15 = arith.constant 0 : index
    %c0_16 = arith.constant 0 : index
    %46 = vector.load %arg6[%c0_15, %c0_16] : memref<1x128xf32, #tpu.memory_space<vmem>>, vector<1x128xf32>
    %47 = vector.broadcast %46 : vector<1x128xf32> to vector<32x128xf32>
    %48 = arith.addf %45, %47 : vector<32x128xf32>
    %c0_17 = arith.constant 0 : index
    %c0_18 = arith.constant 0 : index
    %49 = vector.load %arg7[%c0_17, %c0_18] : memref<32x128xf32, #tpu.memory_space<vmem>>, vector<32x128xf32>
    tpu.vector_store %arg7[%c0_17, %c0_18], %48 {strides = array<i32>} : memref<32x128xf32, #tpu.memory_space<vmem>>, vector<32x128xf32>,
    return
  }
  func.func @transform_0(%arg0: i32) -> (i32, i32) {
    %c0_i32 = arith.constant 0 : i32
    %c0_i32_0 = arith.constant 0 : i32
    return %arg0, %c0_i32 : i32, i32
  }
  func.func @transform_1(%arg0: i32) -> (i32, i32) {
    %c0_i32 = arith.constant 0 : i32
    %c0_i32_0 = arith.constant 0 : i32
    %c0_i32_1 = arith.constant 0 : i32
    return %c0_i32, %c0_i32_0 : i32, i32
  }
  func.func @transform_2(%arg0: i32) -> (i32, i32) {
    %c0_i32 = arith.constant 0 : i32
    %c0_i32_0 = arith.constant 0 : i32
    %c0_i32_1 = arith.constant 0 : i32
    return %c0_i32, %c0_i32_0 : i32, i32
  }
  func.func @transform_3(%arg0: i32) -> (i32, i32) {
    %c0_i32 = arith.constant 0 : i32
    %c0_i32_0 = arith.constant 0 : i32
    %c0_i32_1 = arith.constant 0 : i32
    return %c0_i32, %c0_i32_0 : i32, i32
  }
  func.func @transform_4(%arg0: i32) -> (i32, i32) {
    %c0_i32 = arith.constant 0 : i32
    %c0_i32_0 = arith.constant 0 : i32
    %c0_i32_1 = arith.constant 0 : i32
    return %c0_i32, %c0_i32_0 : i32, i32
  }
  func.func @transform_5(%arg0: i32) -> (i32, i32) {
    %c0_i32 = arith.constant 0 : i32
    %c0_i32_0 = arith.constant 0 : i32
    %c0_i32_1 = arith.constant 0 : i32
    return %c0_i32, %c0_i32_0 : i32, i32
  }
  func.func @transform_6(%arg0: i32) -> (i32, i32) {
    %c0_i32 = arith.constant 0 : i32
    %c0_i32_0 = arith.constant 0 : i32
    return %arg0, %c0_i32 : i32, i32
  }
}

</mosaic_0001>

<bundles_post_ra>
// kernel: bert_embeddings.1
= control target key start
LH: loop header
LB: loop body
LE: loop exit
PB: predicated region body
PF: predicated region fallthrough
CT: control target
= control target key end

     0   :  { %11 = vsyncpa [#allocation3], 0  ;;  %s785_s0 = inlined_call_operand.vmem [shape: s32[32,2], index: 0, kind: input, shape index: {}]   ;;  %s786_s1 = inlined_call_operand.hbm [shape: f32[512,128], index: 1, kind: input, shape index: {}]   ;;  %s787_s2 = inlined_call_operand.vmem [shape: f32[2,128], index: 2, kind: input, shape index: {}]   ;;  %s788_s3 = inlined_call_operand.vmem [shape: f32[16,128], index: 3, kind: input, shape index: {}]   ;;  %s789_s4 = inlined_call_operand.vmem [shape: f32[1,128], index: 4, kind: input, shape index: {}]   ;;  %s790_s5 = inlined_call_operand.vmem [shape: f32[1,128], index: 5, kind: input, shape index: {}]   ;;  %s791_s6 = inlined_call_operand.hbm [shape: f32[32,128], index: 6, kind: output, shape index: {}]  }
   0x1   :  { %12 = vsyncpa [#allocation4], 0  ;;  %s667_s21 = smov [#allocation2]  }
   0x2   :  { %s20_s22 = sshll.u32 %s667_s21, 4  ;;  %s21_s22 = int_to_ptr.vmem [resolvable:$true] %s20_s22 }
   0x3   :  { %s631_s23 = scalar_lea.vmem %s21_s22, 8192  ;;  %p636_p1 = scmp.lt.s32.totalorder %s21_s22, %s21_s22 }
   0x4   :  { %p632_p0 = scmp.ne.s32.totalorder %s21_s22, %s631_s23  ;;  %p637_p2 = scmp.lt.s32.totalorder %s631_s23, %s631_s23 }
   0x6   :  { %p638_p3 = por %p637_p2, %p636_p1 }
   0x8   :  { %p639_p4 = pnand %p638_p3, %p632_p0 }
   0xa   :  { %642 = shalt.err (!%p639_p4)
}
   0xb   :  { %s668_s24 = smov 128   ;;  %s669_s25 = smov 8  }
   0xc   :  { %26 = dma.hbm_to_vmem [thread:$0]  %s786_s1, 8192, %s21_s22, [#allocation3], %s668_s24, %s668_s24, %s669_s25  }
   0xd   :  { %663 = dma.done.wait [#allocation3], 8192  }
   0xe   :  { %664 = vsyncadd [#allocation3], 4294959104  ;;  %v670_v0 = vmov 0   ;;  %v720_v1 = vld [vmem:[%s785_s0] sm:$0xff]  ;;  %v725_v2 = vld [vmem:[%s785_s0 + $0x10] sm:$0xff] }
   0xf   :  { %611 = vset.pattern.permute.xlu0 %v670_v0  ;;  %612 = vset.pattern.permute.xlu1 %v670_v0  ;;  %v730_v3 = vld [vmem:[%s785_s0 + $0x8] sm:$0xff]  ;;  %v737_v4 = vld [vmem:[%s785_s0 + $0x18] sm:$0xff]  ;;  %v137_v9 = vld [vmem:[#allocation2 + $0xf0] sm:$0xff]  ;;  %vm171_vm0 = vcmp.eq.s32.totalorder %v720_v1, 0  ;;  %vm173_vm2 = vcmp.eq.s32.totalorder %v725_v2, 0 }
  0x10   :  { %48 = vperm.xlu0 %611, %v720_v1   ;;  %54 = vperm.xlu1 %612, %v725_v2   ;;  %v138_v5 = vld [vmem:[#allocation2 + $0xf8] sm:$0xff]  ;;  %v169_v10 = vld [vmem:[#allocation2 + $0x1f0] sm:$0xff]  ;;  %v136_v13 = vld [vmem:[#allocation2 + $0xe8] sm:$0xff]  ;;  %vm172_vm1 = vcmp.eq.s32.totalorder %v730_v3, 0  ;;  %vm174_vm3 = vcmp.eq.s32.totalorder %v737_v4, 0  ;;  %v671_v1 = vmov 1  }
  0x11   :  { %v170_v6 = vld [vmem:[#allocation2 + $0x1f8] sm:$0xff]  ;;  %516 = vmatprep.subr.mxu0 %v138_v5  ;;  %v121_v11 = vld [vmem:[#allocation2 + $0x70] sm:$0xff]  ;;  %v168_v14 = vld [vmem:[#allocation2 + $0x1e8] sm:$0xff] }
  0x12   :  { %560 = vmatprep.subr.mxu1 %v170_v6  ;;  %v122_v7 = vld [vmem:[#allocation2 + $0x78] sm:$0xff]  ;;  %v153_v12 = vld [vmem:[#allocation2 + $0x170] sm:$0xff]  ;;  %v120_v15 = vld [vmem:[#allocation2 + $0x68] sm:$0xff] }
  0x13   :  { %v154_v8 = vld [vmem:[#allocation2 + $0x178] sm:$0xff]  ;;  %517 = vmatpush3.msra.mxu0 %v122_v7  ;;  %v152_v16 = vld [vmem:[#allocation2 + $0x168] sm:$0xff]  ;;  %v135_v17 = vld [vmem:[#allocation2 + $0xe0] sm:$0xff] }
  0x14   :  { %561 = vmatpush3.msra.mxu1 %v154_v8  ;;  %518 = vmatprep.subr.mxu0 %v137_v9  ;;  %v167_v18 = vld [vmem:[#allocation2 + $0x1e0] sm:$0xff]  ;;  %v134_v21 = vld [vmem:[#allocation2 + $0xd8] sm:$0xff]  ;;  %v133_v25 = vld [vmem:[#allocation2 + $0xd0] sm:$0xff] }
  0x15   :  { %562 = vmatprep.subr.mxu1 %v169_v10  ;;  %51 = vperm.xlu0 %611, %v730_v3   ;;  %v119_v19 = vld [vmem:[#allocation2 + $0x60] sm:$0xff]  ;;  %v166_v22 = vld [vmem:[#allocation2 + $0x1d8] sm:$0xff]  ;;  %v165_v26 = vld [vmem:[#allocation2 + $0x1d0] sm:$0xff]  ;;  %v177_v10 = vsel %vm171_vm0, 1, %v670_v0  ;;  %v180_v3 = vsel %vm174_vm3, 1, %v670_v0 }
  0x16   :  { %57 = vperm.xlu1 %612, %v737_v4   ;;  %519 = vmatpush3.msra.mxu0 %v121_v11  ;;  %v151_v20 = vld [vmem:[#allocation2 + $0x160] sm:$0xff]  ;;  %v118_v23 = vld [vmem:[#allocation2 + $0x58] sm:$0xff]  ;;  %v117_v27 = vld [vmem:[#allocation2 + $0x50] sm:$0xff]  ;;  %v178_v11 = vsel %vm172_vm1, 1, %v670_v0  ;;  %v672_v4 = vmov 1.0  }
  0x17   :  { %563 = vmatpush3.msra.mxu1 %v153_v12  ;;  %520 = vmatprep.subr.mxu0 %v136_v13  ;;  %v150_v24 = vld [vmem:[#allocation2 + $0x158] sm:$0xff]  ;;  %v149_v28 = vld [vmem:[#allocation2 + $0x150] sm:$0xff]  ;;  %v132_v29 = vld [vmem:[#allocation2 + $0xc8] sm:$0xff]  ;;  %v179_v12 = vsel %vm173_vm2, 1, %v670_v0  ;;  %v42_v13 = vlaneseq }
  0x18   :  { %564 = vmatprep.subr.mxu1 %v168_v14  ;;  %521 = vmatpush3.msra.mxu0 %v120_v15  ;;  %v164_v30 = vld [vmem:[#allocation2 + $0x1c8] sm:$0xff]  ;;  %v131_v33 = vld [vmem:[#allocation2 + $0xc0] sm:$0xff]  ;;  %v130_v37 = vld [vmem:[#allocation2 + $0xb8] sm:$0xff] }
  0x19   :  { %565 = vmatpush3.msra.mxu1 %v152_v16  ;;  %522 = vmatprep.subr.mxu0 %v135_v17  ;;  %v116_v31 = vld [vmem:[#allocation2 + $0x48] sm:$0xff]  ;;  %v163_v34 = vld [vmem:[#allocation2 + $0x1c0] sm:$0xff]  ;;  %v162_v38 = vld [vmem:[#allocation2 + $0x1b8] sm:$0xff]  ;;  %v43_v14 = vand.u32 127, %v42_v13 }
  0x1a   :  { %566 = vmatprep.subr.mxu1 %v167_v18  ;;  %523 = vmatpush3.msra.mxu0 %v119_v19  ;;  %v148_v32 = vld [vmem:[#allocation2 + $0x148] sm:$0xff]  ;;  %v115_v35 = vld [vmem:[#allocation2 + $0x40] sm:$0xff]  ;;  %v114_v39 = vld [vmem:[#allocation2 + $0x38] sm:$0xff] }
  0x1b   :  { %567 = vmatpush3.msra.mxu1 %v151_v20  ;;  %524 = vmatprep.subr.mxu0 %v134_v21  ;;  %v147_v36 = vld [vmem:[#allocation2 + $0x140] sm:$0xff]  ;;  %v146_v40 = vld [vmem:[#allocation2 + $0x138] sm:$0xff]  ;;  %v129_v41 = vld [vmem:[#allocation2 + $0xb0] sm:$0xff]  ;;  %v44_v15 = vadd.s32 128, %v43_v14  ;;  %v46_v16 = vadd.s32 384, %v43_v14  ;;  %v45_v2 = vadd.s32 256, %v43_v14 }
  0x1c   :  { %568 = vmatprep.subr.mxu1 %v166_v22  ;;  %525 = vmatpush3.msra.mxu0 %v118_v23  ;;  %v161_v42 = vld [vmem:[#allocation2 + $0x1b0] sm:$0xff]  ;;  %v128_v45 = vld [vmem:[#allocation2 + $0xa8] sm:$0xff]  ;;  %v127_v49 = vld [vmem:[#allocation2 + $0xa0] sm:$0xff] }
  0x1d   :  { %569 = vmatpush3.msra.mxu1 %v150_v24  ;;  %526 = vmatprep.subr.mxu0 %v133_v25  ;;  %v113_v43 = vld [vmem:[#allocation2 + $0x30] sm:$0xff]  ;;  %v160_v46 = vld [vmem:[#allocation2 + $0x1a8] sm:$0xff]  ;;  %v159_v50 = vld [vmem:[#allocation2 + $0x1a0] sm:$0xff] }
  0x1e   :  { %570 = vmatprep.subr.mxu1 %v165_v26  ;;  %527 = vmatpush3.msra.mxu0 %v117_v27  ;;  %v145_v44 = vld [vmem:[#allocation2 + $0x130] sm:$0xff]  ;;  %v112_v47 = vld [vmem:[#allocation2 + $0x28] sm:$0xff]  ;;  %v111_v51 = vld [vmem:[#allocation2 + $0x20] sm:$0xff] }
  0x1f   :  { %571 = vmatpush3.msra.mxu1 %v149_v28  ;;  %528 = vmatprep.subr.mxu0 %v132_v29  ;;  %v144_v48 = vld [vmem:[#allocation2 + $0x128] sm:$0xff]  ;;  %v143_v52 = vld [vmem:[#allocation2 + $0x120] sm:$0xff]  ;;  %v126_v53 = vld [vmem:[#allocation2 + $0x98] sm:$0xff] }
  0x20   :  { %572 = vmatprep.subr.mxu1 %v164_v30  ;;  %529 = vmatpush3.msra.mxu0 %v116_v31  ;;  %v158_v54 = vld [vmem:[#allocation2 + $0x198] sm:$0xff]  ;;  %v125_v57 = vld [vmem:[#allocation2 + $0x90] sm:$0xff]  ;;  %v124_v61 = vld [vmem:[#allocation2 + $0x88] sm:$0xff] }
  0x21   :  { %573 = vmatpush3.msra.mxu1 %v148_v32  ;;  %530 = vmatprep.subr.mxu0 %v131_v33  ;;  %v110_v55 = vld [vmem:[#allocation2 + $0x18] sm:$0xff]  ;;  %v157_v58 = vld [vmem:[#allocation2 + $0x190] sm:$0xff]  ;;  %v156_v62 = vld [vmem:[#allocation2 + $0x188] sm:$0xff] }
  0x22   :  { %574 = vmatprep.subr.mxu1 %v163_v34  ;;  %531 = vmatpush3.msra.mxu0 %v115_v35  ;;  %v142_v56 = vld [vmem:[#allocation2 + $0x118] sm:$0xff]  ;;  %v109_v59 = vld [vmem:[#allocation2 + $0x10] sm:$0xff]  ;;  %v108_v63 = vld [vmem:[#allocation2 + $0x8] sm:$0xff] }
  0x23   :  { %575 = vmatpush3.msra.mxu1 %v147_v36  ;;  %532 = vmatprep.subr.mxu0 %v130_v37  ;;  %v141_v60 = vld [vmem:[#allocation2 + $0x110] sm:$0xff]  ;;  %v140_v5 = vld [vmem:[#allocation2 + $0x108] sm:$0xff]  ;;  %v123_v6 = vld [vmem:[#allocation2 + $0x80] sm:$0xff] }
  0x24   :  { %576 = vmatprep.subr.mxu1 %v162_v38  ;;  %533 = vmatpush3.msra.mxu0 %v114_v39  ;;  %v155_v7 = vld [vmem:[#allocation2 + $0x180] sm:$0xff] }
  0x25   :  { %577 = vmatpush3.msra.mxu1 %v146_v40  ;;  %534 = vmatprep.subr.mxu0 %v129_v41  ;;  %v107_v8 = vld [vmem:[#allocation2] sm:$0xff] }
  0x26   :  { %578 = vmatprep.subr.mxu1 %v161_v42  ;;  %535 = vmatpush3.msra.mxu0 %v113_v43  ;;  %v139_v9 = vld [vmem:[#allocation2 + $0x100] sm:$0xff] }
  0x27   :  { %579 = vmatpush3.msra.mxu1 %v145_v44  ;;  %536 = vmatprep.subr.mxu0 %v128_v45  ;;  %v496_v21 = vld [vmem:[%s787_s2] ss:$0 sm:$0xff]  ;;  %v497_v22 = vld [vmem:[%s787_s2 + $0x1] ss:$0 sm:$0xff] }
  0x28   :  { %580 = vmatprep.subr.mxu1 %v160_v46  ;;  %537 = vmatpush3.msra.mxu0 %v112_v47  ;;  %v379_v38 = vld [vmem:[%s788_s3] sm:$0xff]  ;;  %v380_v47 = vld [vmem:[%s788_s3 + $0x8] sm:$0xff] }
  0x29   :  { %581 = vmatpush3.msra.mxu1 %v144_v48  ;;  %538 = vmatprep.subr.mxu0 %v127_v49 }
  0x2a   :  { %582 = vmatprep.subr.mxu1 %v159_v50  ;;  %539 = vmatpush3.msra.mxu0 %v111_v51 }
  0x2b   :  { %583 = vmatpush3.msra.mxu1 %v143_v52  ;;  %540 = vmatprep.subr.mxu0 %v126_v53 }
  0x2c   :  { %584 = vmatprep.subr.mxu1 %v158_v54  ;;  %541 = vmatpush3.msra.mxu0 %v110_v55 }
  0x2d   :  { %585 = vmatpush3.msra.mxu1 %v142_v56  ;;  %542 = vmatprep.subr.mxu0 %v125_v57 }
  0x2e   :  { %586 = vmatprep.subr.mxu1 %v157_v58  ;;  %543 = vmatpush3.msra.mxu0 %v109_v59 }
  0x2f   :  { %587 = vmatpush3.msra.mxu1 %v141_v60  ;;  %544 = vmatprep.subr.mxu0 %v124_v61 }
  0x30   :  { %588 = vmatprep.subr.mxu1 %v156_v62  ;;  %545 = vmatpush3.msra.mxu0 %v108_v63 }
  0x31   :  { %589 = vmatpush3.msra.mxu1 %v140_v5  ;;  %546 = vmatprep.subr.mxu0 %v123_v6 }
  0x32   :  { %590 = vmatprep.subr.mxu1 %v155_v7  ;;  %547 = vmatpush3.msra.mxu0 %v107_v8 }
  0x33   :  { %591 = vmatpush3.msra.mxu1 %v139_v9  ;;  %613 = vset.pattern.permute.xlu0 %v671_v1 }
  0x34   :  { %614 = vset.pattern.permute.xlu1 %v671_v1  ;;  %182 = vperm.xlu0 %613, %v177_v10  }
  0x35   :  { %185 = vperm.xlu1 %614, %v178_v11  }
  0x38   :  { %191 = vperm.xlu0 %613, %v180_v3  }
  0x39   :  { %188 = vperm.xlu1 %614, %v179_v12  }
  0x8b   :  { %v49_v17 = vpop.permute.xlu0 %48  ;;  %v55_v18 = vpop.permute.xlu1 %54 }
  0x8c   :  { %vm60_vm4 = vcmp.eq.s32.totalorder %v44_v15, %v49_v17  ;;  %vm62_vm5 = vcmp.eq.s32.totalorder %v46_v16, %v49_v17  ;;  %vm59_vm6 = vcmp.eq.s32.totalorder %v43_v14, %v49_v17  ;;  %vm61_vm7 = vcmp.eq.s32.totalorder %v45_v2, %v49_v17 }
  0x8d   :  { %498 = vmatprep.mubr.msk.f32.mxu0 %vm60_vm4, %v672_v4  ;;  %506 = vmatprep.mubr.msk.f32.mxu1 %vm62_vm5, %v672_v4  ;;  %vm68_vm8 = vcmp.eq.s32.totalorder %v44_v15, %v55_v18  ;;  %vm70_vm9 = vcmp.eq.s32.totalorder %v46_v16, %v55_v18  ;;  %vm67_vm14 = vcmp.eq.s32.totalorder %v43_v14, %v55_v18 }
  0x8e   :  { %499 = vmatmul.mubr.msk.f32.vlgmr.msra.gmra.mxu0 %vm59_vm6, %v672_v4  ;;  %507 = vmatmul.mubr.msk.f32.vlgmr.msra.gmra.mxu1 %vm61_vm7, %v672_v4  ;;  %vm69_vm15 = vcmp.eq.s32.totalorder %v45_v2, %v55_v18 }
  0x90   :  { %v52_v19 = vpop.permute.xlu0 %51 }
  0x91   :  { %vm64_vm10 = vcmp.eq.s32.totalorder %v44_v15, %v52_v19  ;;  %vm66_vm11 = vcmp.eq.s32.totalorder %v46_v16, %v52_v19  ;;  %vm63_vm12 = vcmp.eq.s32.totalorder %v43_v14, %v52_v19  ;;  %vm65_vm13 = vcmp.eq.s32.totalorder %v45_v2, %v52_v19  ;;  %v58_v0 = vpop.permute.xlu1 %57 }
  0x92   :  { %500 = vmatprep.mubr.msk.f32.mxu0 %vm64_vm10, %v672_v4  ;;  %508 = vmatprep.mubr.msk.f32.mxu1 %vm66_vm11, %v672_v4  ;;  %vm72_vm0 = vcmp.eq.s32.totalorder %v44_v15, %v58_v0  ;;  %vm74_vm1 = vcmp.eq.s32.totalorder %v46_v16, %v58_v0  ;;  %vm71_vm2 = vcmp.eq.s32.totalorder %v43_v14, %v58_v0 }
  0x93   :  { %501 = vmatmul.mubr.msk.f32.gmra.mxu0 %vm63_vm12, %v672_v4  ;;  %509 = vmatmul.mubr.msk.f32.gmra.mxu1 %vm65_vm13, %v672_v4  ;;  %vm73_vm3 = vcmp.eq.s32.totalorder %v45_v2, %v58_v0 }
  0x94   :  { %502 = vmatprep.mubr.msk.f32.mxu0 %vm68_vm8, %v672_v4  ;;  %510 = vmatprep.mubr.msk.f32.mxu1 %vm70_vm9, %v672_v4 }
  0x97   :  { %503 = vmatmul.mubr.msk.f32.gmra.mxu0 %vm67_vm14, %v672_v4  ;;  %511 = vmatmul.mubr.msk.f32.gmra.mxu1 %vm69_vm15, %v672_v4 }
  0x98   :  { %504 = vmatprep.mubr.msk.f32.mxu0 %vm72_vm0, %v672_v4  ;;  %512 = vmatprep.mubr.msk.f32.mxu1 %vm74_vm1, %v672_v4 }
  0x9b   :  { %505 = vmatmul.mubr.msk.f32.gmra.mxu0 %vm71_vm2, %v672_v4  ;;  %513 = vmatmul.mubr.msk.f32.gmra.mxu1 %vm73_vm3, %v672_v4 }
  0xaf   :  { %v183_v20 = vpop.permute.xlu0 %182 }
  0xb0   :  { %vm193_vm4 = vcmp.eq.s32.totalorder %v183_v20, 1  ;;  %v186_v23 = vpop.permute.xlu1 %185 }
  0xb1   :  { %v205_v26 = vsel %vm193_vm4, %v496_v21, %v497_v22  ;;  %vm194_vm5 = vcmp.eq.s32.totalorder %v186_v23, 1 }
  0xb2   :  { %v206_v35 = vsel %vm194_vm5, %v496_v21, %v497_v22 }
  0xb3   :  { %v192_v43 = vpop.permute.xlu0 %191 }
  0xb4   :  { %v189_v34 = vpop.permute.xlu1 %188  ;;  %vm196_vm7 = vcmp.eq.s32.totalorder %v192_v43, 1 }
  0xb5   :  { %vm195_vm6 = vcmp.eq.s32.totalorder %v189_v34, 1  ;;  %v208_v5 = vsel %vm196_vm7, %v496_v21, %v497_v22 }
  0xb6   :  { %v207_v53 = vsel %vm195_vm6, %v496_v21, %v497_v22 }
 0x14e   :  { %v548_v24 = vpop.f32.mrf.mxu0  ;;  %v592_v25 = vpop.f32.mrf.mxu1 }
 0x150   :  { %v549_v27 = vpop.f32.mrf.mxu0  ;;  %v593_v28 = vpop.f32.mrf.mxu1 }
 0x151   :  { %v550_v29 = vadd.f32 %v549_v27, %v548_v24  ;;  %v594_v33 = vadd.f32 %v593_v28, %v592_v25 }
 0x153   :  { %v551_v30 = vpop.f32.mrf.mxu0  ;;  %v595_v31 = vpop.f32.mrf.mxu1  ;;  %v276_v32 = vadd.f32 %v550_v29, %v205_v26 }
 0x155   :  { %v552_v36 = vpop.f32.mrf.mxu0  ;;  %v596_v37 = vpop.f32.mrf.mxu1  ;;  %v361_v39 = vadd.f32 %v594_v33, %v276_v32 }
 0x156   :  { %v553_v40 = vadd.f32 %v552_v36, %v551_v30  ;;  %v597_v45 = vadd.f32 %v596_v37, %v595_v31 }
 0x157   :  { %v554_v41 = vpop.f32.mrf.mxu0  ;;  %v598_v42 = vpop.f32.mrf.mxu1  ;;  %v758_v46 = vadd.f32 %v379_v38, %v361_v39 }
 0x158   :  { %v281_v44 = vadd.f32 %v553_v40, %v206_v35  ;;  %v515_v40 = vld [vmem:[%s790_s5] ss:$0 sm:$0xff] }
 0x159   :  { %v555_v48 = vpop.f32.mrf.mxu0  ;;  %v599_v49 = vpop.f32.mrf.mxu1  ;;  %385 = vadd.xlane.f32.xlu1 %v758_v46  ;;  %v397_v52 = vmul.f32 %v758_v46, %v758_v46 }
 0x15a   :  { %v366_v50 = vadd.f32 %v597_v45, %v281_v44  ;;  %v556_v51 = vadd.f32 %v555_v48, %v554_v41  ;;  %v600_v58 = vadd.f32 %v599_v49, %v598_v42 }
 0x15b   :  { %v557_v54 = vpop.f32.mrf.mxu0  ;;  %v601_v55 = vpop.f32.mrf.mxu1  ;;  %401 = vadd.xlane.f32.xlu0 %v397_v52 }
 0x15c   :  { %v766_v56 = vadd.f32 %v380_v47, %v366_v50  ;;  %v286_v57 = vadd.f32 %v556_v51, %v207_v53 }
 0x15d   :  { %v558_v59 = vpop.f32.mrf.mxu0  ;;  %v602_v60 = vpop.f32.mrf.mxu1 }
 0x15e   :  { %v371_v61 = vadd.f32 %v600_v58, %v286_v57  ;;  %v559_v62 = vadd.f32 %v558_v59, %v557_v54  ;;  %v398_v63 = vmul.f32 %v766_v56, %v766_v56  ;;  %v603_v7 = vadd.f32 %v602_v60, %v601_v55 }
 0x15f   :  { %387 = vadd.xlane.f32.xlu0 %v766_v56 }
 0x160   :  { %v291_v6 = vadd.f32 %v559_v62, %v208_v5  ;;  %403 = vadd.xlane.f32.xlu1 %v398_v63  ;;  %v383_v9 = vadd.f32 %v379_v38, %v371_v61  ;;  %v514_v38 = vld [vmem:[%s789_s4] ss:$0 sm:$0xff]  ;;  %s673_s4 = smov [#allocation5]  }
 0x161   :  { %s468_s20 = sshll.u32 %s673_s4, 4  ;;  %s469_s20 = int_to_ptr.vmem [resolvable:$true] %s468_s20 }
 0x162   :  { %v376_v8 = vadd.f32 %v603_v7, %v291_v6  ;;  %v399_v11 = vmul.f32 %v383_v9, %v383_v9  ;;  %s643_s5 = scalar_lea.vmem %s469_s20, 512  ;;  %p648_p6 = scmp.lt.s32.totalorder %s469_s20, %s469_s20 }
 0x163   :  { %389 = vadd.xlane.f32.xlu0 %v383_v9  ;;  %p644_p5 = scmp.ne.s32.totalorder %s469_s20, %s643_s5  ;;  %p649_p7 = scmp.lt.s32.totalorder %s643_s5, %s643_s5 }
 0x164   :  { %v384_v10 = vadd.f32 %v380_v47, %v376_v8 }
 0x165   :  { %p650_p8 = por %p649_p7, %p648_p6 }
 0x166   :  { %391 = vadd.xlane.f32.xlu1 %v384_v10  ;;  %v400_v1 = vmul.f32 %v384_v10, %v384_v10 }
 0x167   :  { %405 = vadd.xlane.f32.xlu0 %v399_v11  ;;  %p651_p9 = pnand %p650_p8, %p644_p5 }
 0x16a   :  { %407 = vadd.xlane.f32.xlu1 %v400_v1 }
 0x1e2   :  { %v386_v3 = vpop.xlane.xlu1 %385 }
 0x1e3   :  { %v393_v12 = vmul.f32 0.0078125, %v386_v3 }
 0x1e4   :  { %v402_v13 = vpop.xlane.xlu0 %401 }
 0x1e5   :  { %v413_v14 = vmul.f32 %v393_v12, %v393_v12  ;;  %v409_v15 = vmul.f32 0.0078125, %v402_v13  ;;  %v421_v35 = vsub.f32 %v758_v46, %v393_v12 }
 0x1e7   :  { %v417_v16 = vsub.f32 %v409_v15, %v413_v14 }
 0x1e8   :  { %v388_v17 = vpop.xlane.xlu0 %387 }
 0x1e9   :  { %v404_v2 = vpop.xlane.xlu1 %403  ;;  %v425_v4 = vadd.f32 1e-12, %v417_v16  ;;  %v394_v18 = vmul.f32 0.0078125, %v388_v17 }
 0x1ea   :  { %v410_v19 = vmul.f32 0.0078125, %v404_v2 }
 0x1eb   :  { %615 = vrsqrt.f32 %v425_v4  ;;  %v414_v0 = vmul.f32 %v394_v18, %v394_v18  ;;  %v422_v42 = vsub.f32 %v766_v56, %v394_v18 }
 0x1ec   :  { %v390_v20 = vpop.xlane.xlu0 %389 }
 0x1ed   :  { %v418_v21 = vsub.f32 %v410_v19, %v414_v0  ;;  %v395_v22 = vmul.f32 0.0078125, %v390_v20 }
 0x1ef   :  { %v392_v23 = vpop.xlane.xlu1 %391  ;;  %v426_v24 = vadd.f32 1e-12, %v418_v21  ;;  %v415_v27 = vmul.f32 %v395_v22, %v395_v22  ;;  %v423_v48 = vsub.f32 %v383_v9, %v395_v22 }
 0x1f0   :  { %v396_v25 = vmul.f32 0.0078125, %v392_v23  ;;  %v406_v26 = vpop.xlane.xlu0 %405 }
 0x1f1   :  { %617 = vrsqrt.f32 %v426_v24  ;;  %v411_v28 = vmul.f32 0.0078125, %v406_v26 }
 0x1f2   :  { %v416_v30 = vmul.f32 %v396_v25, %v396_v25  ;;  %v424_v50 = vsub.f32 %v384_v10, %v396_v25 }
 0x1f3   :  { %v408_v29 = vpop.xlane.xlu1 %407  ;;  %v419_v31 = vsub.f32 %v411_v28, %v415_v27 }
 0x1f4   :  { %v412_v32 = vmul.f32 0.0078125, %v408_v29 }
 0x1f5   :  { %v427_v33 = vadd.f32 1e-12, %v419_v31 }
 0x1f6   :  { %v420_v34 = vsub.f32 %v412_v32, %v416_v30 }
 0x1f7   :  { %619 = vrsqrt.f32 %v427_v33 }
 0x1f8   :  { %v428_v36 = vadd.f32 1e-12, %v420_v34  ;;  %v616_v37 = vpop.eup %615 }
 0x1f9   :  { %v433_v39 = vmul.f32 %v616_v37, %v421_v35 }
 0x1fa   :  { %621 = vrsqrt.f32 %v428_v36 }
 0x1fb   :  { %v444_v41 = vmul.f32 %v514_v38, %v433_v39 }
 0x1fd   :  { %v455_v43 = vadd.f32 %v515_v40, %v444_v41 }
 0x1fe   :  { %v618_v44 = vpop.eup %617 }
 0x1ff   :  { %v434_v45 = vmul.f32 %v618_v44, %v422_v42  ;;  %459 = vst [vmem:[#allocation5] sm:$0xff] %v455_v43 }
 0x201   :  { %v445_v46 = vmul.f32 %v514_v38, %v434_v45 }
 0x203   :  { %v456_v47 = vadd.f32 %v515_v40, %v445_v46 }
 0x204   :  { %v620_v49 = vpop.eup %619 }
 0x205   :  { %460 = vst [vmem:[#allocation5 + $0x8] sm:$0xff] %v456_v47  ;;  %v435_v51 = vmul.f32 %v620_v49, %v423_v48 }
 0x207   :  { %v622_v52 = vpop.eup %621  ;;  %v446_v54 = vmul.f32 %v514_v38, %v435_v51 }
 0x208   :  { %v436_v53 = vmul.f32 %v622_v52, %v424_v50 }
 0x209   :  { %v457_v57 = vadd.f32 %v515_v40, %v446_v54 }
 0x20a   :  { %v447_v55 = vmul.f32 %v514_v38, %v436_v53 }
 0x20b   :  { %461 = vst [vmem:[#allocation5 + $0x10] sm:$0xff] %v457_v57 }
 0x20c   :  { %v458_v58 = vadd.f32 %v515_v40, %v447_v55 }
 0x20e   :  { %462 = vst [vmem:[#allocation5 + $0x18] sm:$0xff] %v458_v58 }
 0x20f   :  { %654 = shalt.err (!%p651_p9)
}
 0x210   :  { %474 = dma.vmem_to_hbm [thread:$0]  %s469_s20, 512, %s791_s6, [#allocation4], %s668_s24, %s668_s24, %s669_s25  }
 0x211   :  { %665 = dma.done.wait [#allocation4], 512  }
 0x212   :  { %666 = vsyncadd [#allocation4], 4294966784 }
 0x213   :  { %478 = vsyncpa [#allocation3], 1 }
 0x214   :  { %479 = vsyncpa [#allocation4], 1 }

</bundles_post_ra>
